<compile_context>
chip_gen: v6e
topology: v6e:2x2x1
jax: 0.10.0
libtpu: 0.0.40
codegen_flags: <defaults>
</compile_context>

<pallas_src>
import math

import jax
import jax.numpy as jnp
from jax.experimental import pallas as pl
from jax.experimental.pallas import tpu as pltpu

INPUT_DIM = 1
HIDDEN_DIM = 100
OUTPUT_DIM = 5
PAD_DIM = 128          # lane-aligned hidden width used inside the kernel
OUT_PAD = 8            # sublane-aligned output width (5 -> 8), sliced in wrapper


def _round_up(n, m):
    return ((n + m - 1) // m) * m


def mlp_kernel(x_ref, w1_ref, b1_ref, w2_ref, b2_ref, w3_ref, b3_ref, o_ref):
    # Layer 1: Linear(1, 128pad) + ReLU as a broadcast outer product on the VPU
    # (x: (TB, 1), w1: (1, 128)) -> (TB, 128).  No MXU round-trip for K=1.
    h1 = jnp.maximum(x_ref[...] * w1_ref[...] + b1_ref[...], 0.0)

    # Layer 2: Linear(128pad, 128pad) + ReLU on the MXU.  Operands may be bf16
    # (w2 dtype), accumulation is always f32; bias + ReLU stay f32 (VPU).
    h2 = jnp.dot(h1.astype(w2_ref.dtype), w2_ref[...],
                 preferred_element_type=jnp.float32)
    h2 = jnp.maximum(h2 + b2_ref[...], 0.0)

    # Layer 3: Linear(128pad, 8pad), no activation.  Narrow (TB, 8) store.
    out = jnp.dot(h2.astype(w3_ref.dtype), w3_ref[...],
                  preferred_element_type=jnp.float32)
    o_ref[...] = (out + b3_ref[...]).astype(o_ref.dtype)


def net_forward(x, padded_params, *, tb=4096):
    """x: (B, 1) float32 -> (B, 5) float32."""
    w1, b1, w2, b2, w3, b3 = padded_params
    B = x.shape[0]

    # Batch tile: large enough to amortize per-step pipeline overhead, but at
    # most half the (8-row-aligned) batch so the "parallel" axis has >=2 grid
    # steps to shard across both v7x TensorCores on big batches.
    TB = min(tb, max(8, _round_up(pl.cdiv(B, 2), 8)))
    grid_b = pl.cdiv(B, TB)
    B_pad = grid_b * TB
    if B_pad != B:
        x = jnp.pad(x, ((0, B_pad - B), (0, 0)))

    # Weights/biases: full-array blocks, same block every grid step
    # -> stay resident in VMEM across the whole batch loop.
    resident = lambda a: pl.BlockSpec(a.shape, lambda i: (0,) * a.ndim,
                                      memory_space=pltpu.VMEM)

    flops = 2 * B_pad * (INPUT_DIM * PAD_DIM + PAD_DIM * PAD_DIM
                         + PAD_DIM * OUT_PAD)
    bytes_accessed = (B_pad * (INPUT_DIM + OUT_PAD) * 4
                      + sum(int(a.size) * a.dtype.itemsize
                            for a in padded_params))

    out = pl.pallas_call(
        mlp_kernel,
        out_shape=jax.ShapeDtypeStruct((B_pad, OUT_PAD), jnp.float32),
        grid=(grid_b,),
        in_specs=[
            pl.BlockSpec((TB, INPUT_DIM), lambda i: (i, 0),
                         memory_space=pltpu.VMEM),
            resident(w1), resident(b1),
            resident(w2), resident(b2),
            resident(w3), resident(b3),
        ],
        out_specs=pl.BlockSpec((TB, OUT_PAD), lambda i: (i, 0),
                               memory_space=pltpu.VMEM),
        compiler_params=pltpu.CompilerParams(
            dimension_semantics=("parallel",)),
        cost_estimate=pl.CostEstimate(flops=flops, transcendentals=0,
                                      bytes_accessed=bytes_accessed),
    )(x, w1, b1, w2, b2, w3, b3)

    # Slice away output padding (cols 5:8) and batch padding (rows B:B_pad).
    return out[:B, :OUTPUT_DIM]


def init_params(key):
    """Deterministic init mimicking PyTorch nn.Linear default
    (uniform(-1/sqrt(fan_in), 1/sqrt(fan_in)) for both weight and bias).
    Weights are stored transposed: (in_features, out_features)."""
    def linear(key, fan_in, fan_out):
        kw, kb = jax.random.split(key)
        bound = 1.0 / math.sqrt(fan_in)
        w = jax.random.uniform(kw, (fan_in, fan_out), jnp.float32,
                               minval=-bound, maxval=bound)
        b = jax.random.uniform(kb, (1, fan_out), jnp.float32,
                               minval=-bound, maxval=bound)
        return w, b

    k1, k2, k3 = jax.random.split(key, 3)
    w1, b1 = linear(k1, INPUT_DIM, HIDDEN_DIM)
    w2, b2 = linear(k2, HIDDEN_DIM, HIDDEN_DIM)
    w3, b3 = linear(k3, HIDDEN_DIM, OUTPUT_DIM)
    return (w1, b1, w2, b2, w3, b3)


def pad_params(params, matmul_dtype=jnp.float32):
    """Zero-pad feature dims (100->128 hidden, 5->8 output) once, outside the
    kernel.  Zero padding is exact: padded h1/h2 columns are ReLU(0)=0 and
    contribute nothing; padded output columns are 0 and sliced off.
    MXU weights (w2, w3) may be cast to bf16; biases / w1 stay f32 (VPU)."""
    w1, b1, w2, b2, w3, b3 = params

    def pad_to(a, rows, cols):
        return jnp.pad(a, ((0, rows - a.shape[0]), (0, cols - a.shape[1])))

    return (pad_to(w1, INPUT_DIM, PAD_DIM),                        # (1, 128) f32
            pad_to(b1, 1, PAD_DIM),                                # (1, 128) f32
            pad_to(w2, PAD_DIM, PAD_DIM).astype(matmul_dtype),     # (128, 128)
            pad_to(b2, 1, PAD_DIM),                                # (1, 128) f32
            pad_to(w3, PAD_DIM, OUT_PAD).astype(matmul_dtype),     # (128, 8)
            pad_to(b3, 1, OUT_PAD))                                # (1, 8)  f32


def reference_forward(x, params, matmul_dtype=jnp.float32):
    """Pure-JAX reference with the same operand dtypes as the kernel."""
    w1, b1, w2, b2, w3, b3 = params
    h1 = jnp.maximum(x @ w1 + b1, 0.0)
    h2 = jnp.dot(h1.astype(matmul_dtype), w2.astype(matmul_dtype),
                 preferred_element_type=jnp.float32)
    h2 = jnp.maximum(h2 + b2, 0.0)
    out = jnp.dot(h2.astype(matmul_dtype), w3.astype(matmul_dtype),
                  preferred_element_type=jnp.float32)
    return out + b3


if __name__ == "__main__":
    key = jax.random.PRNGKey(0)
    kp, kx = jax.random.split(key)

    params = init_params(kp)

    batch = 8
    x = jax.random.normal(kx, (batch, INPUT_DIM), jnp.float32)

    # f32 path (bit-comparable to the PyTorch module): strict check.
    out_f32 = net_forward(x, pad_params(params, jnp.float32))
    jax.block_until_ready(out_f32)
    ref_f32 = reference_forward(x, params)
    assert out_f32.shape == (batch, OUTPUT_DIM), out_f32.shape
    assert jnp.allclose(out_f32, ref_f32, atol=1e-5, rtol=1e-5), \
        "f32 kernel mismatch vs reference"

    # bf16-operand / f32-accumulate path (MXU-native on v5e/v6e/v7x): compare
    # against a matching bf16-operand reference with a looser tolerance.
    out_bf16 = net_forward(x, pad_params(params, jnp.bfloat16))
    jax.block_until_ready(out_bf16)
    ref_bf16 = reference_forward(x, params, matmul_dtype=jnp.bfloat16)
    assert out_bf16.shape == (batch, OUTPUT_DIM), out_bf16.shape
    assert jnp.allclose(out_bf16, ref_bf16, atol=2e-2, rtol=2e-2), \
        "bf16 kernel mismatch vs bf16 reference"

    print("KERNEL_OK")
</pallas_src>

<mosaic_0001>
module attributes {stable_mosaic.version = 11 : i64} {
  func.func @mlp_kernel(%arg0: i32, %arg1: memref<8x1xf32, #tpu.memory_space<vmem>>, %arg2: memref<1x128xf32, #tpu.memory_space<vmem>>, %arg3: memref<1x128xf32, #tpu.memory_space<vmem>>, %arg4: memref<128x128xf32, #tpu.memory_space<vmem>>, %arg5: memref<1x128xf32, #tpu.memory_space<vmem>>, %arg6: memref<128x8xf32, #tpu.memory_space<vmem>>, %arg7: memref<1x8xf32, #tpu.memory_space<vmem>>, %arg8: memref<8x8xf32, #tpu.memory_space<vmem>>) attributes {dimension_semantics = [#tpu.dimension_semantics<parallel>], iteration_bounds = array<i64: 1>, scalar_prefetch = 0 : i64, scratch_operands = 0 : i64, tpu.core_type = #tpu.core_type<tc>, window_params = [{transform_indices = @transform_0, window_bounds = array<i64: 8, 1>}, {pipeline_mode = #tpu.pipeline_mode<synchronous>, transform_indices = @transform_1, window_bounds = array<i64: 1, 128>}, {pipeline_mode = #tpu.pipeline_mode<synchronous>, transform_indices = @transform_2, window_bounds = array<i64: 1, 128>}, {pipeline_mode = #tpu.pipeline_mode<synchronous>, transform_indices = @transform_3, window_bounds = array<i64: 128, 128>}, {pipeline_mode = #tpu.pipeline_mode<synchronous>, transform_indices = @transform_4, window_bounds = array<i64: 1, 128>}, {pipeline_mode = #tpu.pipeline_mode<synchronous>, transform_indices = @transform_5, window_bounds = array<i64: 128, 8>}, {pipeline_mode = #tpu.pipeline_mode<synchronous>, transform_indices = @transform_6, window_bounds = array<i64: 1, 8>}, {transform_indices = @transform_7, window_bounds = array<i64: 8, 8>}]} {
    %c0 = arith.constant 0 : index
    %c0_0 = arith.constant 0 : index
    %0 = vector.load %arg1[%c0, %c0_0] : memref<8x1xf32, #tpu.memory_space<vmem>>, vector<8x1xf32>
    %c0_1 = arith.constant 0 : index
    %c0_2 = arith.constant 0 : index
    %1 = vector.load %arg2[%c0_1, %c0_2] : memref<1x128xf32, #tpu.memory_space<vmem>>, vector<1x128xf32>
    %2 = vector.broadcast %0 : vector<8x1xf32> to vector<8x128xf32>
    %3 = vector.broadcast %1 : vector<1x128xf32> to vector<8x128xf32>
    %4 = arith.mulf %2, %3 : vector<8x128xf32>
    %c0_3 = arith.constant 0 : index
    %c0_4 = arith.constant 0 : index
    %5 = vector.load %arg3[%c0_3, %c0_4] : memref<1x128xf32, #tpu.memory_space<vmem>>, vector<1x128xf32>
    %6 = vector.broadcast %5 : vector<1x128xf32> to vector<8x128xf32>
    %7 = arith.addf %4, %6 : vector<8x128xf32>
    %cst = arith.constant 0.000000e+00 : f32
    %8 = vector.broadcast %cst : f32 to vector<8x128xf32>
    %9 = arith.maximumf %7, %8 : vector<8x128xf32>
    %c0_5 = arith.constant 0 : index
    %c0_6 = arith.constant 0 : index
    %10 = vector.load %arg4[%c0_5, %c0_6] : memref<128x128xf32, #tpu.memory_space<vmem>>, vector<128x128xf32>
    %cst_7 = arith.constant dense<0.000000e+00> : vector<8x128xf32>
    %11 = tpu.matmul %9, %10, %cst_7 {dimension_numbers = #tpu.dot_dimension_numbers<[1], [0], [0], [1], [0, 0, 1, 1], [], []>} : vector<8x128xf32>, vector<128x128xf32>, vector<8x128xf32> -> vector<8x128xf32>
    %c0_8 = arith.constant 0 : index
    %c0_9 = arith.constant 0 : index
    %12 = vector.load %arg5[%c0_8, %c0_9] : memref<1x128xf32, #tpu.memory_space<vmem>>, vector<1x128xf32>
    %13 = vector.broadcast %12 : vector<1x128xf32> to vector<8x128xf32>
    %14 = arith.addf %11, %13 : vector<8x128xf32>
    %cst_10 = arith.constant 0.000000e+00 : f32
    %15 = vector.broadcast %cst_10 : f32 to vector<8x128xf32>
    %16 = arith.maximumf %14, %15 : vector<8x128xf32>
    %c0_11 = arith.constant 0 : index
    %c0_12 = arith.constant 0 : index
    %17 = vector.load %arg6[%c0_11, %c0_12] : memref<128x8xf32, #tpu.memory_space<vmem>>, vector<128x8xf32>
    %cst_13 = arith.constant dense<0.000000e+00> : vector<8x8xf32>
    %18 = tpu.matmul %16, %17, %cst_13 {dimension_numbers = #tpu.dot_dimension_numbers<[1], [0], [0], [1], [0, 0, 1, 1], [], []>} : vector<8x128xf32>, vector<128x8xf32>, vector<8x8xf32> -> vector<8x8xf32>
    %c0_14 = arith.constant 0 : index
    %c0_15 = arith.constant 0 : index
    %19 = vector.load %arg7[%c0_14, %c0_15] : memref<1x8xf32, #tpu.memory_space<vmem>>, vector<1x8xf32>
    %20 = vector.broadcast %19 : vector<1x8xf32> to vector<8x8xf32>
    %21 = arith.addf %18, %20 : vector<8x8xf32>
    %c0_16 = arith.constant 0 : index
    %c0_17 = arith.constant 0 : index
    %22 = vector.load %arg8[%c0_16, %c0_17] : memref<8x8xf32, #tpu.memory_space<vmem>>, vector<8x8xf32>
    tpu.vector_store %arg8[%c0_16, %c0_17], %21 {strides = array<i32>} : memref<8x8xf32, #tpu.memory_space<vmem>>, vector<8x8xf32>,
    return
  }
  func.func @transform_0(%arg0: i32) -> (i32, i32) {
    %c0_i32 = arith.constant 0 : i32
    %c0_i32_0 = arith.constant 0 : i32
    return %arg0, %c0_i32 : i32, i32
  }
  func.func @transform_1(%arg0: i32) -> (i32, i32) {
    %c0_i32 = arith.constant 0 : i32
    %c0_i32_0 = arith.constant 0 : i32
    %c0_i32_1 = arith.constant 0 : i32
    return %c0_i32, %c0_i32_0 : i32, i32
  }
  func.func @transform_2(%arg0: i32) -> (i32, i32) {
    %c0_i32 = arith.constant 0 : i32
    %c0_i32_0 = arith.constant 0 : i32
    %c0_i32_1 = arith.constant 0 : i32
    return %c0_i32, %c0_i32_0 : i32, i32
  }
  func.func @transform_3(%arg0: i32) -> (i32, i32) {
    %c0_i32 = arith.constant 0 : i32
    %c0_i32_0 = arith.constant 0 : i32
    %c0_i32_1 = arith.constant 0 : i32
    return %c0_i32, %c0_i32_0 : i32, i32
  }
  func.func @transform_4(%arg0: i32) -> (i32, i32) {
    %c0_i32 = arith.constant 0 : i32
    %c0_i32_0 = arith.constant 0 : i32
    %c0_i32_1 = arith.constant 0 : i32
    return %c0_i32, %c0_i32_0 : i32, i32
  }
  func.func @transform_5(%arg0: i32) -> (i32, i32) {
    %c0_i32 = arith.constant 0 : i32
    %c0_i32_0 = arith.constant 0 : i32
    %c0_i32_1 = arith.constant 0 : i32
    return %c0_i32, %c0_i32_0 : i32, i32
  }
  func.func @transform_6(%arg0: i32) -> (i32, i32) {
    %c0_i32 = arith.constant 0 : i32
    %c0_i32_0 = arith.constant 0 : i32
    %c0_i32_1 = arith.constant 0 : i32
    return %c0_i32, %c0_i32_0 : i32, i32
  }
  func.func @transform_7(%arg0: i32) -> (i32, i32) {
    %c0_i32 = arith.constant 0 : i32
    %c0_i32_0 = arith.constant 0 : i32
    return %arg0, %c0_i32 : i32, i32
  }
}

</mosaic_0001>

<bundles_post_ra>
// kernel: tpu_custom_call.1
= control target key start
LH: loop header
LB: loop body
LE: loop exit
PB: predicated region body
PF: predicated region fallthrough
CT: control target
= control target key end

     0   :  { %v388_v2 = vmov 0   ;;  %v389_v3 = vmov 0.0   ;;  %vm390_vm0 = vmmov 0   ;;  %s580_s0 = inlined_call_operand.vmem [shape: f32[8,1], index: 0, kind: input, shape index: {}]   ;;  %s581_s1 = inlined_call_operand.vmem [shape: f32[1,128], index: 1, kind: input, shape index: {}]   ;;  %s582_s2 = inlined_call_operand.vmem [shape: f32[1,128], index: 2, kind: input, shape index: {}]   ;;  %s583_s3 = inlined_call_operand.vmem [shape: f32[128,128], index: 3, kind: input, shape index: {}]   ;;  %s584_s4 = inlined_call_operand.vmem [shape: f32[1,128], index: 4, kind: input, shape index: {}]   ;;  %s585_s5 = inlined_call_operand.vmem [shape: f32[128,8], index: 5, kind: input, shape index: {}]   ;;  %s586_s6 = inlined_call_operand.vmem [shape: f32[1,8], index: 6, kind: input, shape index: {}]   ;;  %s587_s7 = inlined_call_operand.hbm [shape: f32[8,8], index: 7, kind: output, shape index: {}]  }
   0x1   :  { %v27_v0 = vld [vmem:[%s580_s0] sm:$0xff]  ;;  %v65_v1 = vld [vmem:[%s583_s3 + $0x78] sm:$0xff]  ;;  %365 = vset.pattern.permute.xlu0 %v388_v2  ;;  %291 = vmatprep.subr.mxu0 %v389_v3  ;;  %v64_v4 = vld [vmem:[%s583_s3 + $0x70] sm:$0xff] }
   0x2   :  { %31 = vperm.xlu0 %365, %v27_v0   ;;  %292 = vmatpush3.msra.mxu0 %v65_v1  ;;  %v63_v5 = vld [vmem:[%s583_s3 + $0x68] sm:$0xff]  ;;  %v62_v6 = vld [vmem:[%s583_s3 + $0x60] sm:$0xff]  ;;  %v159_v7 = vld [vmem:[%s585_s5 + $0x78] sm:$0xff] }
   0x3   :  { %293 = vmatprep.subr.mxu0 %v389_v3  ;;  %323 = vmatprep.mubr.msk.f32.mxu0 %vm390_vm0, %v389_v3  ;;  %v158_v8 = vld [vmem:[%s585_s5 + $0x70] sm:$0xff]  ;;  %v61_v9 = vld [vmem:[%s583_s3 + $0x58] sm:$0xff]  ;;  %v157_v10 = vld [vmem:[%s585_s5 + $0x68] sm:$0xff] }
   0x4   :  { %294 = vmatpush3.msra.mxu0 %v64_v4  ;;  %326 = vmatprep.subr.mxu1 %v389_v3  ;;  %v60_v11 = vld [vmem:[%s583_s3 + $0x50] sm:$0xff]  ;;  %v156_v12 = vld [vmem:[%s585_s5 + $0x60] sm:$0xff]  ;;  %v59_v13 = vld [vmem:[%s583_s3 + $0x48] sm:$0xff] }
   0x5   :  { %295 = vmatprep.subr.mxu0 %v389_v3  ;;  %358 = vmatprep.mubr.msk.f32.mxu1 %vm390_vm0, %v389_v3 }
   0x6   :  { %296 = vmatpush3.msra.mxu0 %v63_v5  ;;  %327 = vmatpush3.msra.mxu1 %v159_v7 }
   0x7   :  { %297 = vmatprep.subr.mxu0 %v389_v3  ;;  %328 = vmatprep.subr.mxu1 %v389_v3 }
   0x8   :  { %298 = vmatpush3.msra.mxu0 %v62_v6  ;;  %329 = vmatpush3.msra.mxu1 %v158_v8 }
   0x9   :  { %299 = vmatprep.subr.mxu0 %v389_v3  ;;  %330 = vmatprep.subr.mxu1 %v389_v3 }
   0xa   :  { %300 = vmatpush3.msra.mxu0 %v61_v9  ;;  %331 = vmatpush3.msra.mxu1 %v157_v10 }
   0xb   :  { %301 = vmatprep.subr.mxu0 %v389_v3 }
   0xc   :  { %12 = vsyncpa [#allocation3], 0  ;;  %302 = vmatpush3.msra.mxu0 %v60_v11  ;;  %332 = vmatprep.subr.mxu1 %v389_v3  ;;  %v155_v14 = vld [vmem:[%s585_s5 + $0x58] sm:$0xff]  ;;  %v58_v15 = vld [vmem:[%s583_s3 + $0x40] sm:$0xff]  ;;  %s391_s23 = smov [#allocation2]   ;;  %vm237_vm1 = vcmask 64512  }
   0xd   :  { %303 = vmatprep.subr.mxu0 %v389_v3  ;;  %333 = vmatpush3.msra.mxu1 %v156_v12  ;;  %v154_v16 = vld [vmem:[%s585_s5 + $0x50] sm:$0xff]  ;;  %v57_v17 = vld [vmem:[%s583_s3 + $0x38] sm:$0xff]  ;;  %v153_v18 = vld [vmem:[%s585_s5 + $0x48] sm:$0xff]  ;;  %s245_s24 = sshll.u32 %s391_s23, 4  ;;  %s246_s24 = int_to_ptr.vmem [resolvable:$true] %s245_s24 }
   0xe   :  { %304 = vmatpush3.msra.mxu0 %v59_v13  ;;  %334 = vmatprep.subr.mxu1 %v389_v3  ;;  %v56_v19 = vld [vmem:[%s583_s3 + $0x30] sm:$0xff]  ;;  %v152_v20 = vld [vmem:[%s585_s5 + $0x40] sm:$0xff]  ;;  %v55_v21 = vld [vmem:[%s583_s3 + $0x28] sm:$0xff]  ;;  %p371_p1 = scmp.lt.s32.totalorder %s246_s24, %s246_s24 }
   0xf   :  { %305 = vmatprep.subr.mxu0 %v389_v3  ;;  %335 = vmatpush3.msra.mxu1 %v155_v14  ;;  %v151_v22 = vld [vmem:[%s585_s5 + $0x38] sm:$0xff]  ;;  %v54_v23 = vld [vmem:[%s583_s3 + $0x20] sm:$0xff]  ;;  %v150_v24 = vld [vmem:[%s585_s5 + $0x30] sm:$0xff] }
  0x10   :  { %306 = vmatpush3.msra.mxu0 %v58_v15  ;;  %336 = vmatprep.subr.mxu1 %v389_v3  ;;  %v53_v25 = vld [vmem:[%s583_s3 + $0x18] sm:$0xff]  ;;  %v149_v26 = vld [vmem:[%s585_s5 + $0x28] sm:$0xff]  ;;  %v52_v27 = vld [vmem:[%s583_s3 + $0x10] sm:$0xff] }
  0x11   :  { %307 = vmatprep.subr.mxu0 %v389_v3  ;;  %337 = vmatpush3.msra.mxu1 %v154_v16  ;;  %v148_v28 = vld [vmem:[%s585_s5 + $0x20] sm:$0xff]  ;;  %v51_v29 = vld [vmem:[%s583_s3 + $0x8] sm:$0xff]  ;;  %v147_v30 = vld [vmem:[%s585_s5 + $0x18] sm:$0xff] }
  0x12   :  { %308 = vmatpush3.msra.mxu0 %v57_v17  ;;  %338 = vmatprep.subr.mxu1 %v389_v3  ;;  %v50_v31 = vld [vmem:[%s583_s3] sm:$0xff]  ;;  %v146_v38 = vld [vmem:[%s585_s5 + $0x10] sm:$0xff]  ;;  %v145_v39 = vld [vmem:[%s585_s5 + $0x8] sm:$0xff] }
  0x13   :  { %309 = vmatprep.subr.mxu0 %v389_v3  ;;  %339 = vmatpush3.msra.mxu1 %v153_v18  ;;  %v253_v32 = vld [vmem:[%s581_s1] ss:$0 sm:$0xff] }
  0x14   :  { %310 = vmatpush3.msra.mxu0 %v56_v19  ;;  %340 = vmatprep.subr.mxu1 %v389_v3  ;;  %v254_v33 = vld [vmem:[%s582_s2] ss:$0 sm:$0xff] }
  0x15   :  { %311 = vmatprep.subr.mxu0 %v389_v3  ;;  %341 = vmatpush3.msra.mxu1 %v152_v20  ;;  %v144_v40 = vld [vmem:[%s585_s5] sm:$0xff]  ;;  %s366_s5 = scalar_lea.vmem %s246_s24, 128 }
  0x16   :  { %312 = vmatpush3.msra.mxu0 %v55_v21  ;;  %342 = vmatprep.subr.mxu1 %v389_v3  ;;  %v255_v41 = vld [vmem:[%s584_s4] ss:$0 sm:$0xff]  ;;  %p367_p0 = scmp.ne.s32.totalorder %s246_s24, %s366_s5  ;;  %p372_p2 = scmp.lt.s32.totalorder %s366_s5, %s366_s5 }
  0x17   :  { %313 = vmatprep.subr.mxu0 %v389_v3  ;;  %343 = vmatpush3.msra.mxu1 %v151_v22  ;;  %v256_v46 = vld [vmem:[%s586_s6] ss:$0 sm:$0xff] }
  0x18   :  { %314 = vmatpush3.msra.mxu0 %v54_v23  ;;  %344 = vmatprep.subr.mxu1 %v389_v3  ;;  %p373_p3 = por %p372_p2, %p371_p1 }
  0x19   :  { %315 = vmatprep.subr.mxu0 %v389_v3  ;;  %345 = vmatpush3.msra.mxu1 %v150_v24 }
  0x1a   :  { %316 = vmatpush3.msra.mxu0 %v53_v25  ;;  %346 = vmatprep.subr.mxu1 %v389_v3  ;;  %p374_p4 = pnand %p373_p3, %p367_p0 }
  0x1b   :  { %317 = vmatprep.subr.mxu0 %v389_v3  ;;  %347 = vmatpush3.msra.mxu1 %v149_v26 }
  0x1c   :  { %318 = vmatpush3.msra.mxu0 %v52_v27  ;;  %348 = vmatprep.subr.mxu1 %v389_v3 }
  0x1d   :  { %319 = vmatprep.subr.mxu0 %v389_v3  ;;  %349 = vmatpush3.msra.mxu1 %v148_v28 }
  0x1e   :  { %320 = vmatpush3.msra.mxu0 %v51_v29  ;;  %350 = vmatprep.subr.mxu1 %v389_v3 }
  0x1f   :  { %321 = vmatprep.subr.mxu0 %v389_v3  ;;  %351 = vmatpush3.msra.mxu1 %v147_v30 }
  0x20   :  { %322 = vmatpush3.msra.mxu0 %v50_v31  ;;  %352 = vmatprep.subr.mxu1 %v389_v3 }
  0x21   :  { %353 = vmatpush3.msra.mxu1 %v146_v38 }
  0x22   :  { %354 = vmatprep.subr.mxu1 %v389_v3 }
  0x23   :  { %355 = vmatpush3.msra.mxu1 %v145_v39 }
  0x24   :  { %356 = vmatprep.subr.mxu1 %v389_v3 }
  0x25   :  { %357 = vmatpush3.msra.mxu1 %v144_v40 }
  0x7d   :  { %v32_v34 = vpop.permute.xlu0 %31 }
  0x7e   :  { %v40_v35 = vmul.f32 %v253_v32, %v32_v34 }
  0x80   :  { %v48_v36 = vadd.f32 %v254_v33, %v40_v35 }
  0x82   :  { %v49_v37 = vmax.f32 %v48_v36, 0.0 }
  0x84   :  { %324 = vmatmul.mubr.f32.vlgmr.msra.gmra.mxu0 %v49_v37 }
 0x144   :  { %v139_v42 = vpop.f32.mrf.mxu0 }
 0x145   :  { %v140_v43 = vadd.f32 %v255_v41, %v139_v42 }
 0x146   :  { %v325_v44 = vpop.f32.mrf.mxu0 }
 0x147   :  { %v143_v45 = vmax.f32 %v140_v43, 0.0 }
 0x149   :  { %359 = vmatmul.mubr.f32.vlgmr.msra.gmra.mxu1 %v143_v45 }
 0x209   :  { %v233_v47 = vpop.f32.mrf.mxu1 }
 0x20a   :  { %v234_v48 = vadd.f32 %v256_v46, %v233_v47 }
 0x20b   :  { %v360_v49 = vpop.f32.mrf.mxu1 }
 0x20c   :  { %238 = vst.msk [vmem:[#allocation2] sm:$0xff] %vm237_vm1, %v234_v48 }
 0x20d   :  { %377 = shalt.err (!%p374_p4)
}
 0x20e   :  { %248 = dma.vmem_to_hbm [thread:$0]  %s246_s24, 128, %s587_s7, [#allocation3]  }
 0x20f   :  { %386 = dma.done.wait [#allocation3], 128  }
 0x210   :  { %387 = vsyncadd [#allocation3], 4294967168 }
 0x211   :  { %252 = vsyncpa [#allocation3], 1 }

</bundles_post_ra>
